<compile_context>
chip_gen: v7x
topology: tpu7x:2x2x1
jax: 0.10.0
libtpu: 0.0.40
codegen_flags: <defaults>
</compile_context>

<pallas_src>
import numpy as np
import jax
import jax.numpy as jnp
from jax.experimental import pallas as pl
from jax.experimental.pallas import tpu as pltpu


def conv1x1_bn_lrelu_kernel(x_ref, w_ref, scale_ref, bias_ref, o_ref):
    # x_ref     : (1, Cin, T)   one batch element, T spatial positions on the lane axis
    # w_ref     : (Cout, Cin)   1x1 conv weight (OIHW squeezed to OI)
    # scale_ref : (Cout, 1)     folded BN scale  gamma / sqrt(var + eps)   (f32)
    # bias_ref  : (Cout, 1)     folded BN bias   beta - mean * scale       (f32)
    # o_ref     : (1, Cout, T)
    acc = jnp.dot(w_ref[...], x_ref[0],
                  preferred_element_type=jnp.float32)        # (Cout, T) on the MXU
    out = acc * scale_ref[...] + bias_ref[...]               # BatchNorm (inference, folded)
    out = jnp.where(out > 0, out, 0.01 * out)                # LeakyReLU, slope 0.01
    o_ref[0] = out.astype(o_ref.dtype)


def _pick_spatial_tile(hw, max_tile=4096):
    """Largest lane-dense tile (multiple of 128) that evenly divides hw, else full hw."""
    if hw % 128 != 0:
        return hw
    t = min(hw, max_tile)
    t -= t % 128
    while hw % t:
        t -= 128
    return t


def basic_block_rescale_forward(x_nchw, weight_oihw, gamma, beta,
                                running_mean, running_var, eps=1e-5,
                                stride=1, compute_dtype=None):
    """BasicBlock_Rescale.forward: LeakyReLU(BN(conv1x1(x))), BN folded from running
    stats (eval mode)."""
    N, Cin, H, W = x_nchw.shape
    Cout = weight_oihw.shape[0]
    assert weight_oihw.shape[1] == Cin and tuple(weight_oihw.shape[2:]) == (1, 1)

    if stride > 1:
        # a strided 1x1 conv is a spatial subsample followed by a 1x1 conv
        x_nchw = x_nchw[:, :, ::stride, ::stride]
        N, Cin, H, W = x_nchw.shape

    out_dtype = x_nchw.dtype
    if compute_dtype is None:
        compute_dtype = x_nchw.dtype

    HW = H * W
    x = x_nchw.reshape(N, Cin, HW).astype(compute_dtype)      # metadata-only reshape
    w = weight_oihw.reshape(Cout, Cin).astype(compute_dtype)

    inv_std = 1.0 / jnp.sqrt(running_var.astype(jnp.float32) + eps)
    g32 = gamma.astype(jnp.float32)
    scale = (g32 * inv_std).reshape(Cout, 1)
    bias = (beta.astype(jnp.float32)
            - running_mean.astype(jnp.float32) * g32 * inv_std).reshape(Cout, 1)

    t_hw = _pick_spatial_tile(HW)
    grid = (N, HW // t_hw)

    # VMEM budget: x tile + out tile, double buffered, plus weights/scale/bias + headroom.
    in_item = jnp.dtype(compute_dtype).itemsize
    out_item = jnp.dtype(out_dtype).itemsize
    tile_bytes = t_hw * (Cin * in_item + Cout * out_item)
    vmem_limit = int(min(max(4 * tile_bytes + (1 << 20), 16 << 20), 32 << 20))

    out = pl.pallas_call(
        conv1x1_bn_lrelu_kernel,
        out_shape=jax.ShapeDtypeStruct((N, Cout, HW), out_dtype),
        grid_spec=pltpu.PrefetchScalarGridSpec(
            num_scalar_prefetch=0,
            grid=grid,
            in_specs=[
                pl.BlockSpec((1, Cin, t_hw), lambda n, t: (n, 0, t)),
                pl.BlockSpec((Cout, Cin), lambda n, t: (0, 0)),
                pl.BlockSpec((Cout, 1), lambda n, t: (0, 0)),
                pl.BlockSpec((Cout, 1), lambda n, t: (0, 0)),
            ],
            out_specs=pl.BlockSpec((1, Cout, t_hw), lambda n, t: (n, 0, t)),
        ),
        compiler_params=pltpu.CompilerParams(
            dimension_semantics=("parallel", "parallel"),
            vmem_limit_bytes=vmem_limit),
    )(x, w, scale, bias)

    return out.reshape(N, Cout, H, W)


def basic_block_rescale_reference(x, weight, gamma, beta, mean, var, eps=1e-5, stride=1):
    """Pure-JAX reference mirroring the PyTorch forward in eval mode."""
    out = jax.lax.conv_general_dilated(
        x, weight, window_strides=(stride, stride), padding=((0, 0), (0, 0)),
        dimension_numbers=('NCHW', 'OIHW', 'NCHW'))
    inv = 1.0 / jnp.sqrt(var + eps)
    s = (gamma * inv)[None, :, None, None]
    b = (beta - mean * gamma * inv)[None, :, None, None]
    out = out * s + b
    return jnp.where(out > 0, out, 0.01 * out)


if __name__ == "__main__":
    # Small shapes consistent with the module: batch=2, inplanes=planes=4, spatial=16x16.
    N, C, H, W = 2, 4, 16, 16
    inplanes = planes = C
    key = jax.random.PRNGKey(0)
    kx, kw, km, kv, kg, kb = jax.random.split(key, 6)

    x = jax.random.normal(kx, (N, inplanes, H, W), dtype=jnp.float32)
    # conv1x1(inplanes, planes, stride=1): weight (Cout, Cin, 1, 1), bias=False
    fan_in = inplanes
    weight = jax.random.normal(kw, (planes, inplanes, 1, 1), dtype=jnp.float32) / np.sqrt(fan_in)
    # BatchNorm2d(planes) parameters / running stats (deterministic synthetic values)
    gamma = 1.0 + 0.1 * jax.random.normal(kg, (planes,), dtype=jnp.float32)
    beta = 0.1 * jax.random.normal(kb, (planes,), dtype=jnp.float32)
    running_mean = 0.1 * jax.random.normal(km, (planes,), dtype=jnp.float32)
    running_var = 1.0 + jnp.abs(0.1 * jax.random.normal(kv, (planes,), dtype=jnp.float32))

    ref = basic_block_rescale_reference(x, weight, gamma, beta, running_mean, running_var)

    # f32 path (tight tolerance).
    out = basic_block_rescale_forward(x, weight, gamma, beta, running_mean, running_var)
    out = jax.block_until_ready(out)
    np.testing.assert_allclose(np.asarray(out), np.asarray(ref), rtol=1e-5, atol=1e-5)

    # bf16 activation/weight path (f32 accumulation + f32 epilogue), looser tolerance.
    out_bf16 = basic_block_rescale_forward(
        x, weight, gamma, beta, running_mean, running_var, compute_dtype=jnp.bfloat16)
    out_bf16 = jax.block_until_ready(out_bf16)
    np.testing.assert_allclose(np.asarray(out_bf16), np.asarray(ref), rtol=5e-2, atol=5e-2)

    print("KERNEL_OK")
</pallas_src>

<mosaic_0001>
module attributes {stable_mosaic.version = 11 : i64} {
  func.func @conv1x1_bn_lrelu_kernel(%arg0: i32, %arg1: i32, %arg2: memref<1x4x256xf32, #tpu.memory_space<vmem>>, %arg3: memref<4x4xf32, #tpu.memory_space<vmem>>, %arg4: memref<4x1xf32, #tpu.memory_space<vmem>>, %arg5: memref<4x1xf32, #tpu.memory_space<vmem>>, %arg6: memref<1x4x256xf32, #tpu.memory_space<vmem>>) attributes {dimension_semantics = [#tpu.dimension_semantics<parallel>, #tpu.dimension_semantics<parallel>], iteration_bounds = array<i64: 2, 1>, scalar_prefetch = 0 : i64, scratch_operands = 0 : i64, tpu.core_type = #tpu.core_type<tc>, window_params = [{transform_indices = @transform_0, window_bounds = array<i64: 1, 4, 256>}, {pipeline_mode = #tpu.pipeline_mode<synchronous>, transform_indices = @transform_1, window_bounds = array<i64: 4, 4>}, {pipeline_mode = #tpu.pipeline_mode<synchronous>, transform_indices = @transform_2, window_bounds = array<i64: 4, 1>}, {pipeline_mode = #tpu.pipeline_mode<synchronous>, transform_indices = @transform_3, window_bounds = array<i64: 4, 1>}, {transform_indices = @transform_4, window_bounds = array<i64: 1, 4, 256>}]} {
    %c0 = arith.constant 0 : index
    %c0_0 = arith.constant 0 : index
    %0 = vector.load %arg3[%c0, %c0_0] : memref<4x4xf32, #tpu.memory_space<vmem>>, vector<4x4xf32>
    %c0_1 = arith.constant 0 : index
    %c0_2 = arith.constant 0 : index
    %c0_3 = arith.constant 0 : index
    %1 = vector.load %arg2[%c0_1, %c0_2, %c0_3] : memref<1x4x256xf32, #tpu.memory_space<vmem>>, vector<1x4x256xf32>
    %2 = vector.shape_cast %1 : vector<1x4x256xf32> to vector<4x256xf32>
    %cst = arith.constant dense<0.000000e+00> : vector<4x256xf32>
    %3 = tpu.matmul %0, %2, %cst {dimension_numbers = #tpu.dot_dimension_numbers<[1], [0], [0], [1], [0, 0, 1, 1], [], []>} : vector<4x4xf32>, vector<4x256xf32>, vector<4x256xf32> -> vector<4x256xf32>
    %c0_4 = arith.constant 0 : index
    %c0_5 = arith.constant 0 : index
    %4 = vector.load %arg4[%c0_4, %c0_5] : memref<4x1xf32, #tpu.memory_space<vmem>>, vector<4x1xf32>
    %5 = vector.broadcast %4 : vector<4x1xf32> to vector<4x256xf32>
    %6 = arith.mulf %3, %5 : vector<4x256xf32>
    %c0_6 = arith.constant 0 : index
    %c0_7 = arith.constant 0 : index
    %7 = vector.load %arg5[%c0_6, %c0_7] : memref<4x1xf32, #tpu.memory_space<vmem>>, vector<4x1xf32>
    %8 = vector.broadcast %7 : vector<4x1xf32> to vector<4x256xf32>
    %9 = arith.addf %6, %8 : vector<4x256xf32>
    %cst_8 = arith.constant 0.000000e+00 : f32
    %10 = vector.broadcast %cst_8 : f32 to vector<4x256xf32>
    %11 = arith.cmpf ogt, %9, %10 : vector<4x256xf32>
    %cst_9 = arith.constant 0.00999999977 : f32
    %12 = vector.broadcast %cst_9 : f32 to vector<4x256xf32>
    %13 = arith.mulf %12, %9 : vector<4x256xf32>
    %14 = arith.select %11, %9, %13 : vector<4x256xi1>, vector<4x256xf32>
    %c0_10 = arith.constant 0 : index
    %c0_11 = arith.constant 0 : index
    %c0_12 = arith.constant 0 : index
    %15 = vector.load %arg6[%c0_10, %c0_11, %c0_12] : memref<1x4x256xf32, #tpu.memory_space<vmem>>, vector<1x4x256xf32>
    %16 = vector.shape_cast %15 : vector<1x4x256xf32> to vector<4x256xf32>
    %17 = vector.shape_cast %14 : vector<4x256xf32> to vector<1x4x256xf32>
    tpu.vector_store %arg6[%c0_10, %c0_11, %c0_12], %17 {strides = array<i32>} : memref<1x4x256xf32, #tpu.memory_space<vmem>>, vector<1x4x256xf32>,
    return
  }
  func.func @transform_0(%arg0: i32, %arg1: i32) -> (i32, i32, i32) {
    %c0_i32 = arith.constant 0 : i32
    %c0_i32_0 = arith.constant 0 : i32
    return %arg0, %c0_i32, %arg1 : i32, i32, i32
  }
  func.func @transform_1(%arg0: i32, %arg1: i32) -> (i32, i32) {
    %c0_i32 = arith.constant 0 : i32
    %c0_i32_0 = arith.constant 0 : i32
    %c0_i32_1 = arith.constant 0 : i32
    return %c0_i32, %c0_i32_0 : i32, i32
  }
  func.func @transform_2(%arg0: i32, %arg1: i32) -> (i32, i32) {
    %c0_i32 = arith.constant 0 : i32
    %c0_i32_0 = arith.constant 0 : i32
    %c0_i32_1 = arith.constant 0 : i32
    return %c0_i32, %c0_i32_0 : i32, i32
  }
  func.func @transform_3(%arg0: i32, %arg1: i32) -> (i32, i32) {
    %c0_i32 = arith.constant 0 : i32
    %c0_i32_0 = arith.constant 0 : i32
    %c0_i32_1 = arith.constant 0 : i32
    return %c0_i32, %c0_i32_0 : i32, i32
  }
  func.func @transform_4(%arg0: i32, %arg1: i32) -> (i32, i32, i32) {
    %c0_i32 = arith.constant 0 : i32
    %c0_i32_0 = arith.constant 0 : i32
    return %arg0, %c0_i32, %arg1 : i32, i32, i32
  }
}

</mosaic_0001>

<bundles_post_ra>
// kernel: tpu_custom_call.1
= control target key start
LH: loop header
LB: loop body
LE: loop exit
PB: predicated region body
PF: predicated region fallthrough
CT: control target
= control target key end

     0   :  { %9 = vsyncpa [#allocation3], 0  ;;  %s860_s0 = inlined_call_operand.hbm [shape: f32[2,4,256], index: 0, kind: input, shape index: {}]   ;;  %s861_s1 = inlined_call_operand.vmem [shape: f32[4,4], index: 1, kind: input, shape index: {}]   ;;  %s862_s2 = inlined_call_operand.vmem [shape: f32[4,1], index: 2, kind: input, shape index: {}]   ;;  %s863_s3 = inlined_call_operand.vmem [shape: f32[4,1], index: 3, kind: input, shape index: {}]   ;;  %s864_s4 = inlined_call_operand.hbm [shape: f32[2,4,256], index: 4, kind: output, shape index: {}]  }
   0x1   :  { %11 = vsyncpa [#allocation3 + $0x1], 0 }
   0x2   :  { %12 = vsyncpa [#allocation4], 0 }
   0x3   :  { %14 = vsyncpa [#allocation4 + $0x1], 0  ;;  %s675_s15 = smov 0   ;;  %s677_s16 = smov 0  }
   0x4   :  { %s679_s17 = smov 0   ;;  %s681_s18 = smov 0  }
   0x5   :  { %s683_s19 = smov 0   ;;  %s685_s20 = smov 0  }
   0x6 LB: > { %s446_s21 = sadd.s32 4294967295, %s644_s20   ;;  %s447_s22 = sadd.s32 4294967294, %s644_s20   ;;  %s644_s20 = sphi %s685_s20, %s20_s20   ;;  %s640_s19 = sphi %s683_s19, %s880_s19   ;;  %s636_s18 = sphi %s681_s18, %s879_s18   ;;  %s632_s17 = sphi %s679_s17, %s878_s17   ;;  %s628_s16 = sphi %s677_s16, %s877_s16   ;;  %s624_s15 = sphi %s675_s15, %s876_s15  }
   0x7   : > { %s32_s23 = sadd.s32 1, %s640_s19  ;;  %s41_s24 = sadd.s32 1, %s632_s17 }
   0x8   : > { %p34_p0 = scmp.ge.s32.totalorder %s32_s23, 2  ;;  %p48_p1 = scmp.ne.s32.totalorder %s632_s17, %s628_s16 }
   0x9   : > { %p49_p2 = scmp.eq.s32.totalorder %s644_s20, 0  ;;  %p54_p3 = scmp.ne.s32.totalorder %s628_s16, %s624_s15 }
   0xa   : > { %s882_s23 = smov (%p34_p0, %s32_s23), 0  ;;  %p55_p5 = scmp.eq.s32.totalorder %s446_s21, 0 }
   0xb   : > { %p716_p4 = por %p49_p2, %p48_p1  ;;  %s36_s26 = ssub.s32 %s640_s19, %s882_s23 }
   0xc   : > { %p143_p6 = scmp.eq.s32.totalorder %s446_s21, 1  ;;  %p39_p7 = scmp.eq.s32.totalorder %s36_s26, 0 }
   0xd   : > { %p722_p8 = por %p55_p5, %p54_p3  ;;  %p149_p10 = scmp.eq.s32.totalorder %s447_s22, 1 }
   0xe   : > { %p726_p9 = por %p143_p6, %p48_p1  ;;  %p478_p13 = scmp.lt.s32.totalorder %s644_s20, 2 }
   0xf   : > { %s731_s29 = scalar_select %p39_p7, %s632_s17, %s41_s24  }
  0x10   : > { %s868_s28 = scalar_select %p726_p9, 1, 0 }
  0x11   : > { %p733_p11 = por %p149_p10, %p54_p3  ;;  %s178_s5 = sand.u32 1, %s632_s17  }
  0x12   : > { %s450_s6 = sshll.u32 %s178_s5, 3  ;;  %s464_s7 = sshll.u32 %s640_s19, 7 }
  0x13   : > { %s869_s30 = scalar_select %p733_p11, 1, 0 }
  0x14   : > { %s744_s10 = scalar_lea.hbm %s860_s0, %s464_s7  ;;  %s182_s11 = scalar_lea.vmem [#allocation2], %s450_s6 }
  0x15   : > { %s192_s12 = sshll.u32 %s182_s11, 4  ;;  %p750_p0 = pnand %p478_p13, %p716_p4  ;;  %s746_s12 = int_to_ptr.vmem [resolvable:$true] %s192_s12 }
  0x16   : > { %s179_s14 = scalar_lea.sflag [#allocation3], %s178_s5  ;;  %s532_s21 = scalar_lea.hbm %s744_s10, 128 }
  0x17   : > { %p533_p3 = scmp.ne.s32.totalorder %s744_s10, %s532_s21  ;;  %p534_p5 = pneg %p750_p0 }
  0x18   : > { %s537_s25 = scalar_lea.hbm %s860_s0, 256  ;;  %p538_p4 = scmp.lt.u32.totalorder %s744_s10, %s860_s0 }
  0x19   : > { %p535_p6 = pnand %p534_p5, %p533_p3  ;;  %p539_p10 = scmp.lt.u32.totalorder %s537_s25, %s532_s21 }
  0x1a   : > { %p541_p12 = scmp.lt.u32.totalorder %s532_s21, %s744_s10 }
  0x1b   : > { %p536_p7 = pneg %p535_p6  ;;  %p540_p13 = por %p539_p10, %p538_p4 }
  0x1d   : > { %p542_p1 = por %p541_p12, %p540_p13 }
  0x1f   : > { %p543_p2 = pnand %p542_p1, %p536_p7 }
  0x21   : > { %546 = shalt.err (!%p543_p2)
}
  0x22   : > { %s547_s5 = scalar_lea.vmem %s746_s12, 128  ;;  %s646_s7 = smov [#allocation2]  }
  0x23   : > { %p548_p3 = scmp.ne.s32.totalorder %s746_s12, %s547_s5  ;;  %s552_s8 = sshll.u32 %s646_s7, 4  ;;  %s553_s8 = int_to_ptr.vmem [resolvable:$false] %s552_s8 }
  0x24   : > { %s554_s9 = scalar_lea.vmem %s553_s8, 256  ;;  %p555_p9 = scmp.lt.s32.totalorder %s746_s12, %s553_s8 }
  0x25   : > { %p550_p6 = pnand %p548_p3, %p534_p5  ;;  %p556_p4 = scmp.lt.s32.totalorder %s554_s9, %s547_s5 }
  0x27   : > { %p551_p11 = pneg %p550_p6  ;;  %p557_p10 = por %p556_p4, %p555_p9 }
  0x29   : > { %p558_p12 = pnand %p557_p10, %p551_p11 }
  0x2b   : > { %561 = shalt.err (!%p558_p12)
}
  0x2c   : > { %473 = dma.hbm_to_vmem [thread:$0]  (!%p750_p0), %s744_s10, 128, %s746_s12, %s179_s14  }
  0x2d   : > { %p871_p1 = scmp.lt.s32.totalorder %s644_s20, 3  ;;  %p872_p2 = scmp.ge.s32.totalorder %s644_s20, 1 }
  0x2f   : > { %p198_p5 = pnand %p872_p2, %p871_p1 }
  0x30   : > { %s786_s11 = sand.u32 (!%p198_p5), 1, %s628_s16  }
  0x31   : > { %201 = sbr.rel (%p198_p5) target bundleno = 298 (0x12a), region = 36  ;;  %s454_s21 = sshll.u32 (!%p198_p5), %s786_s11, 3 }
  0x32   : > { %s204_s22 = scalar_lea.sflag (!%p198_p5), [#allocation3], %s786_s11  ;;  %s207_s13 = scalar_lea.vmem (!%p198_p5), [#allocation2], %s454_s21 }
  0x38   : > { %615 = dma.done.wait (%p722_p8), %s204_s22, 128  }
  0x39   : > { %617 = vsyncadd (%p722_p8), %s204_s22, 4294967168  ;;  %v647_v0 = vmov 0.0   ;;  %v648_v1 = vmov 0   ;;  %v235_v2 = vld [vmem:[%s207_s13] sm:$0xff]  ;;  %vm242_vm0 = vcmask 1043456   ;;  %vm238_vm1 = vcmask 31744  }
  0x3a   : > { %311 = vmatprep.mubr.f32.mxu0 %v647_v0  ;;  %530 = vset.pattern.permute.xlu0 %v648_v1  ;;  %v318_v3 = vld [vmem:[%s862_s2] sm:$0xf]  ;;  %v237_v4 = vcombine.high %v235_v2, %v235_v2  ;;  %s465_s26 = sshll.u32 %s636_s18, 7  ;;  %s231_s6 = scalar_lea.vmem [#allocation5], %s454_s21 }
  0x3b   : > { %321 = vperm.xlu0 %530, %v318_v3   ;;  %v234_v5 = vld [vmem:[%s861_s1] sm:$0xf]  ;;  %s362_s5 = sshll.u32 %s231_s6, 4  ;;  %s811_s9 = scalar_lea.hbm %s864_s4, %s465_s26  ;;  %s813_s5 = int_to_ptr.vmem [resolvable:$true] %s362_s5 }
  0x3c   : > { %v326_v6 = vld [vmem:[%s863_s3] sm:$0xf]  ;;  %456 = vmatprep.subr.msk.mxu0 %vm242_vm0, %v237_v4  ;;  %s346_s22 = scalar_lea.sflag [#allocation4], %s786_s11  ;;  %s562_s13 = scalar_lea.vmem %s813_s5, 128 }
  0x3d   : > { %457 = vmatpush1.msk.msra.mxu0 %vm242_vm0, %v235_v2  ;;  %p563_p8 = scmp.ne.s32.totalorder %s813_s5, %s562_s13  ;;  %p873_p9 = scmp.ne.s32.totalorder %s868_s28, 0 }
  0x3e   : > { %458 = vmatmul.mubr.msk.f32.vlgmr.msra.gmra.mrb[0].mxu0 %vm238_vm1, %v234_v5  ;;  %s649_s18 = smov [#allocation5]  }
  0x3f   : > { %329 = vperm.xlu0 %530, %v326_v6   ;;  %p564_p11 = pnand %p563_p8, %p873_p9  ;;  %s566_s21 = sshll.u32 %s649_s18, 4  ;;  %s567_s21 = int_to_ptr.vmem [resolvable:$false] %s566_s21 }
  0x40   : > { %s568_s10 = scalar_lea.vmem %s567_s21, 256  ;;  %p569_p7 = scmp.lt.s32.totalorder %s813_s5, %s567_s21 }
  0x41   : > { %p565_p0 = pneg %p564_p11  ;;  %p570_p13 = scmp.lt.s32.totalorder %s568_s10, %s562_s13 }
  0x43   : > { %p571_p3 = por %p570_p13, %p569_p7 }
  0x45   : > { %p572_p6 = pnand %p571_p3, %p565_p0 }
  0xba   : > { %v322_v7 = vpop.permute.xlu0 %321 }
  0xbe   : > { %v330_v11 = vpop.permute.xlu0 %329 }
 0x111   : > { %v313_v8 = vpop.f32.mrb[0].mxu0 }
 0x112   : > { %v324_v9 = vmul.f32 %v322_v7, %v313_v8  ;;  %v315_v10 = vpop.f32.mrb[1].mxu0 }
 0x113   : > { %v325_v12 = vmul.f32 %v322_v7, %v315_v10 }
 0x114   : > { %v332_v13 = vadd.f32 %v330_v11, %v324_v9 }
 0x115   : > { %v333_v14 = vadd.f32 %v330_v11, %v325_v12 }
 0x116   : > { %vm334_vm2 = vcmp.gt.f32.partialorder %v332_v13, 0.0  ;;  %v336_v15 = vmul.f32 0.01, %v332_v13 }
 0x117   : > { %vm335_vm3 = vcmp.gt.f32.partialorder %v333_v14, 0.0  ;;  %v337_v16 = vmul.f32 0.01, %v333_v14 }
 0x118   : > { %v338_v17 = vsel %vm334_vm2, %v332_v13, %v336_v15 }
 0x119   : > { %v339_v18 = vsel %vm335_vm3, %v333_v14, %v337_v16 }
 0x11a   : > { %v342_v19 = vcombine.low %v338_v17, %v339_v18 }
 0x11c   : > { %344 = vst [vmem:[%s231_s6] sm:$0xff] %v342_v19 }
 0x11d   : > { %575 = shalt.err (!%p572_p6)
}
 0x11e   : > { %s576_s11 = scalar_lea.hbm %s811_s9, 128  ;;  %s580_s24 = scalar_lea.hbm %s864_s4, 256 }
 0x11f   : > { %p577_p4 = scmp.ne.s32.totalorder %s811_s9, %s576_s11  ;;  %p581_p1 = scmp.lt.u32.totalorder %s811_s9, %s864_s4 }
 0x120   : > { %p582_p2 = scmp.lt.u32.totalorder %s580_s24, %s576_s11  ;;  %p584_p8 = scmp.lt.u32.totalorder %s576_s11, %s811_s9 }
 0x121   : > { %p578_p10 = pnand %p577_p4, %p873_p9 }
 0x122   : > { %p583_p5 = por %p582_p2, %p581_p1 }
 0x123   : > { %p579_p12 = pneg %p578_p10 }
 0x124   : > { %p585_p11 = por %p584_p8, %p583_p5 }
 0x126   : > { %p586_p0 = pnand %p585_p11, %p579_p12 }
 0x128   : > { %589 = shalt.err (!%p586_p0)
}
 0x129   : > { %468 = dma.vmem_to_hbm [thread:$0]  (%p873_p9), %s813_s5, 128, %s811_s9, %s346_s22  }
 0x12a PF: > { %s374_s26 = sand.u32 1, %s624_s15   ;;  %p874_p7 = scmp.ne.s32.totalorder %s869_s30, 0 }
 0x12b   : > { %p875_p13 = scmp.ge.s32.totalorder %s644_s20, 2  ;;  %s375_s6 = scalar_lea.sflag [#allocation4], %s374_s26 }
 0x12d   : > { %p475_p3 = pnand %p875_p13, %p874_p7 }
 0x12f   : > { %619 = dma.done.wait (!%p475_p3), %s375_s6, 128  }
 0x130   : > { %621 = vsyncadd (!%p475_p3), %s375_s6, 4294967168  ;;  %s20_s20 = sadd.s32 1, %s644_s20   ;;  %s876_s15 = smov %s628_s16 }
 0x131   : > { %p17_p6 = scmp.ge.s32.totalorder %s20_s20, 4   ;;  %s877_s16 = smov %s632_s17 }
 0x132   : > { %s878_s17 = smov %s731_s29  ;;  %s879_s18 = smov %s640_s19 }
 0x133   : > { %s880_s19 = smov %s882_s23  ;;  %19 = sbr.rel (!%p17_p6) target bundleno = 6 (0x6), region = 81 }
 0x13a   :  { %380 = vsyncpa [#allocation3], 1 }
 0x13b   :  { %382 = vsyncpa [#allocation3 + $0x1], 1 }
 0x13c   :  { %383 = vsyncpa [#allocation4], 1 }
 0x13d   :  { %385 = vsyncpa [#allocation4 + $0x1], 1 }

</bundles_post_ra>
